<compile_context>
chip_gen: v7x
topology: tpu7x:2x2x1
jax: 0.10.0
libtpu: 0.0.40
codegen_flags: <defaults>
</compile_context>

<pallas_src>
import jax
import jax.numpy as jnp
import numpy as np
from jax.experimental import pallas as pl
from jax.experimental.pallas import tpu as pltpu

_SUBLANE = 16   # bf16 sublane packing granularity
_LANE = 128     # lane width


def _round_up(a, b):
    return (a + b - 1) // b * b


def _device_defaults():
    """Per-generation (tm, tk, vmem_limit_bytes) defaults."""
    try:
        kind = jax.devices()[0].device_kind.lower()
    except Exception:  # pragma: no cover - defensive only
        kind = ""
    if "v5" in kind:
        # v5e: ~roofline-balanced at tm=256; larger tk halves reduction steps
        # (less accumulator RMW traffic, fewer per-step overheads), fits 128 MiB.
        return 256, 1024, 100 * 1024 * 1024
    if "v7" in kind or "7x" in kind:
        # v7x: only 64 MiB physical VMEM per TC -> moderate tiles, tight cap.
        return 512, 512, 56 * 1024 * 1024
    # v6e / unknown: 128 MiB VMEM, ~918 TF/s vs ~1.4 TB/s HBM -> large tm so
    # the re-streamed weight DMA is hidden under MXU work.
    return 512, 512, 100 * 1024 * 1024


# ---------------------------------------------------------------------------
# Fused MLP kernel:  out[i, :] += relu2(x[i, :] @ W_up[:, k]) @ W_down[k, :]
# ---------------------------------------------------------------------------
def _arcee_mlp_kernel(x_ref, wu_ref, wd_ref, o_ref, acc_ref):
    k = pl.program_id(1)

    @pl.when(k == 0)
    def _():
        acc_ref[...] = jnp.zeros_like(acc_ref)

    # up-projection tile (bf16 operands, f32 accumulate on the MXU)
    h = jnp.dot(x_ref[...], wu_ref[...], preferred_element_type=jnp.float32)
    # relu-squared activation in f32 on the VPU
    h = jnp.maximum(h, 0.0)
    h = h * h
    # Down-projection partial sum for this slab of the intermediate dim.
    # NOTE: the MXU LHS is cast to bf16 (serving precision); accumulation
    # remains f32 in acc_ref.
    acc_ref[...] += jnp.dot(
        h.astype(wd_ref.dtype), wd_ref[...], preferred_element_type=jnp.float32
    )

    @pl.when(k == pl.num_programs(1) - 1)
    def _():
        o_ref[...] = acc_ref[...].astype(o_ref.dtype)


def arcee_mlp(x, w_up, w_down, *, tm=None, tk=None, out_dtype=jnp.bfloat16,
              vmem_limit_bytes=None):
    """x: [M, H], w_up: [H, I] bf16, w_down: [I, H] bf16 -> [M, H] out_dtype."""
    M, H = x.shape
    H2, I = w_up.shape
    I2, Ho = w_down.shape
    assert H == H2 and I == I2

    tm_d, tk_d, vmem_d = _device_defaults()
    tm = tm_d if tm is None else tm
    tk = tk_d if tk is None else tk
    vmem_limit_bytes = vmem_d if vmem_limit_bytes is None else vmem_limit_bytes

    # --- intermediate (reduction) tile: multiple of 128 lanes dividing I ---
    tk = min(tk, I)
    if I % tk != 0:
        tk = _LANE
        for cand in range(min(tk_d, I) // _LANE * _LANE, _LANE - 1, -_LANE):
            if I % cand == 0:
                tk = cand
                break
    assert I % tk == 0 and tk % _LANE == 0, (I, tk)

    # --- token tile: multiple of 16 sublanes; pad M up, slice afterwards ---
    tm = min(tm, _round_up(M, _SUBLANE))
    tm = _round_up(tm, _SUBLANE)
    # Megacore / dual-TC: ensure >= 2 parallel i-tiles when the work allows it.
    if _round_up(M, tm) // tm < 2 and tm >= 4 * _SUBLANE:
        tm = _round_up((M + 1) // 2, _SUBLANE)
    M_pad = _round_up(M, tm)

    x = x.astype(jnp.bfloat16)
    if M_pad != M:
        x = jnp.pad(x, ((0, M_pad - M), (0, 0)))

    num_i_tiles = M_pad // tm
    w_bytes = (w_up.size * w_up.dtype.itemsize
               + w_down.size * w_down.dtype.itemsize)
    cost = pl.CostEstimate(
        flops=2 * M_pad * H * I + 2 * M_pad * I * Ho,
        transcendentals=0,
        # Weights are re-streamed once per token tile.
        bytes_accessed=(x.size * x.dtype.itemsize
                        + num_i_tiles * w_bytes
                        + M_pad * Ho * jnp.dtype(out_dtype).itemsize),
    )

    out = pl.pallas_call(
        _arcee_mlp_kernel,
        out_shape=jax.ShapeDtypeStruct((M_pad, Ho), out_dtype),
        grid_spec=pltpu.PrefetchScalarGridSpec(
            num_scalar_prefetch=0,
            grid=(num_i_tiles, I // tk),
            in_specs=[
                pl.BlockSpec((tm, H), lambda i, k: (i, 0)),    # x tile
                pl.BlockSpec((H, tk), lambda i, k: (0, k)),    # W_up slab
                pl.BlockSpec((tk, Ho), lambda i, k: (k, 0)),   # W_down slab
            ],
            out_specs=pl.BlockSpec((tm, Ho), lambda i, k: (i, 0)),
            scratch_shapes=[pltpu.VMEM((tm, Ho), jnp.float32)],
        ),
        compiler_params=pltpu.CompilerParams(
            dimension_semantics=("parallel", "arbitrary"),
            vmem_limit_bytes=vmem_limit_bytes,
        ),
        cost_estimate=cost,
    )(x, w_up, w_down)

    return out[:M] if M_pad != M else out


# ---------------------------------------------------------------------------
# Module wrapper
# ---------------------------------------------------------------------------
class ArceeMLPPallas:
    def __init__(self, hidden_size: int, intermediate_size: int,
                 hidden_act: str = "relu2", key=None):
        if hidden_act != "relu2":
            raise ValueError(
                f"Unsupported activation: {hidden_act}. "
                "Arcee model only supports 'relu2'."
            )
        self.hidden_size = hidden_size
        self.intermediate_size = intermediate_size

        k1, k2 = jax.random.split(key)
        # Weights stored as [in, out], bias=False, bf16 for the MXU.
        self.w_up = (
            jax.random.normal(k1, (hidden_size, intermediate_size), jnp.float32) * 0.05
        ).astype(jnp.bfloat16)
        self.w_down = (
            jax.random.normal(k2, (intermediate_size, hidden_size), jnp.float32) * 0.05
        ).astype(jnp.bfloat16)

    def __call__(self, x, *, tm=None, tk=None, out_dtype=jnp.bfloat16):
        return arcee_mlp(x, self.w_up, self.w_down, tm=tm, tk=tk,
                         out_dtype=out_dtype)


# ---------------------------------------------------------------------------
# Pure-JAX reference (same math, f32) for a correctness sanity check.
# ---------------------------------------------------------------------------
def reference_forward(mod: ArceeMLPPallas, x):
    xb = x.astype(jnp.bfloat16).astype(jnp.float32)
    wu = mod.w_up.astype(jnp.float32)
    wd = mod.w_down.astype(jnp.float32)
    h = xb @ wu
    h = jnp.maximum(h, 0.0) ** 2
    return h @ wd


# ---------------------------------------------------------------------------
if __name__ == "__main__":
    hidden_size = 256
    intermediate_size = 512
    num_tokens = 40  # deliberately ragged to exercise the padding path

    root = jax.random.PRNGKey(0)
    k_params, k_x = jax.random.split(root)

    mod = ArceeMLPPallas(hidden_size, intermediate_size, "relu2", key=k_params)
    x = jax.random.normal(k_x, (num_tokens, hidden_size), jnp.float32)

    out = mod(x)
    out = jax.block_until_ready(out)
    assert out.shape == (num_tokens, hidden_size), out.shape

    ref = reference_forward(mod, x)
    np.testing.assert_allclose(
        np.asarray(out, dtype=np.float32), np.asarray(ref), rtol=3e-2, atol=3e-2
    )

    print("KERNEL_OK")
</pallas_src>

<mosaic_0001>
module attributes {stable_mosaic.version = 11 : i64} {
  func.func @_arcee_mlp_kernel(%arg0: i32, %arg1: i32, %arg2: memref<48x256xbf16, #tpu.memory_space<vmem>>, %arg3: memref<256x512xbf16, #tpu.memory_space<vmem>>, %arg4: memref<512x256xbf16, #tpu.memory_space<vmem>>, %arg5: memref<48x256xbf16, #tpu.memory_space<vmem>>, %arg6: memref<48x256xf32, #tpu.memory_space<vmem>>) attributes {dimension_semantics = [#tpu.dimension_semantics<parallel>, #tpu.dimension_semantics<arbitrary>], iteration_bounds = array<i64: 1, 1>, scalar_prefetch = 0 : i64, scratch_operands = 1 : i64, tpu.core_type = #tpu.core_type<tc>, window_params = [{transform_indices = @transform_0, window_bounds = array<i64: 48, 256>}, {transform_indices = @transform_1, window_bounds = array<i64: 256, 512>}, {transform_indices = @transform_2, window_bounds = array<i64: 512, 256>}, {transform_indices = @transform_3, window_bounds = array<i64: 48, 256>}]} {
    %c0_i32 = arith.constant 0 : i32
    %0 = arith.cmpi eq, %arg1, %c0_i32 : i32
    %1 = arith.extui %0 : i1 to i32
    %c0_i32_0 = arith.constant 0 : i32
    %2 = arith.cmpi ne, %1, %c0_i32_0 : i32
    scf.if %2 {
      %cst_14 = arith.constant 0.000000e+00 : f32
      %18 = vector.broadcast %cst_14 : f32 to vector<48x256xf32>
      %c0_15 = arith.constant 0 : index
      %c0_16 = arith.constant 0 : index
      %19 = vector.load %arg6[%c0_15, %c0_16] : memref<48x256xf32, #tpu.memory_space<vmem>>, vector<48x256xf32>
      tpu.vector_store %arg6[%c0_15, %c0_16], %18 {strides = array<i32>} : memref<48x256xf32, #tpu.memory_space<vmem>>, vector<48x256xf32>,
    } else {
    }
    %c0 = arith.constant 0 : index
    %c0_1 = arith.constant 0 : index
    %3 = vector.load %arg2[%c0, %c0_1] : memref<48x256xbf16, #tpu.memory_space<vmem>>, vector<48x256xbf16>
    %c0_2 = arith.constant 0 : index
    %c0_3 = arith.constant 0 : index
    %4 = vector.load %arg3[%c0_2, %c0_3] : memref<256x512xbf16, #tpu.memory_space<vmem>>, vector<256x512xbf16>
    %cst = arith.constant dense<0.000000e+00> : vector<48x512xf32>
    %5 = tpu.matmul %3, %4, %cst {dimension_numbers = #tpu.dot_dimension_numbers<[1], [0], [0], [1], [0, 0, 1, 1], [], []>} : vector<48x256xbf16>, vector<256x512xbf16>, vector<48x512xf32> -> vector<48x512xf32>
    %cst_4 = arith.constant 0.000000e+00 : f32
    %6 = vector.broadcast %cst_4 : f32 to vector<48x512xf32>
    %7 = arith.maximumf %5, %6 : vector<48x512xf32>
    %8 = arith.mulf %7, %7 : vector<48x512xf32>
    %c0_5 = arith.constant 0 : index
    %c0_6 = arith.constant 0 : index
    %9 = vector.load %arg6[%c0_5, %c0_6] : memref<48x256xf32, #tpu.memory_space<vmem>>, vector<48x256xf32>
    %10 = arith.truncf %8 : vector<48x512xf32> to vector<48x512xbf16>
    %c0_7 = arith.constant 0 : index
    %c0_8 = arith.constant 0 : index
    %11 = vector.load %arg4[%c0_7, %c0_8] : memref<512x256xbf16, #tpu.memory_space<vmem>>, vector<512x256xbf16>
    %cst_9 = arith.constant dense<0.000000e+00> : vector<48x256xf32>
    %12 = tpu.matmul %10, %11, %cst_9 {dimension_numbers = #tpu.dot_dimension_numbers<[1], [0], [0], [1], [0, 0, 1, 1], [], []>} : vector<48x512xbf16>, vector<512x256xbf16>, vector<48x256xf32> -> vector<48x256xf32>
    %13 = arith.addf %9, %12 : vector<48x256xf32>
    %c0_10 = arith.constant 0 : index
    %c0_11 = arith.constant 0 : index
    %14 = vector.load %arg6[%c0_10, %c0_11] : memref<48x256xf32, #tpu.memory_space<vmem>>, vector<48x256xf32>
    tpu.vector_store %arg6[%c0_10, %c0_11], %13 {strides = array<i32>} : memref<48x256xf32, #tpu.memory_space<vmem>>, vector<48x256xf32>,
    %c0_i32_12 = arith.constant 0 : i32
    %15 = arith.cmpi eq, %arg1, %c0_i32_12 : i32
    %16 = arith.extui %15 : i1 to i32
    %c0_i32_13 = arith.constant 0 : i32
    %17 = arith.cmpi ne, %16, %c0_i32_13 : i32
    scf.if %17 {
      %c0_14 = arith.constant 0 : index
      %c0_15 = arith.constant 0 : index
      %18 = vector.load %arg6[%c0_14, %c0_15] : memref<48x256xf32, #tpu.memory_space<vmem>>, vector<48x256xf32>
      %19 = arith.truncf %18 : vector<48x256xf32> to vector<48x256xbf16>
      %c0_16 = arith.constant 0 : index
      %c0_17 = arith.constant 0 : index
      %20 = vector.load %arg5[%c0_16, %c0_17] : memref<48x256xbf16, #tpu.memory_space<vmem>>, vector<48x256xbf16>
      tpu.vector_store %arg5[%c0_16, %c0_17], %19 {strides = array<i32>} : memref<48x256xbf16, #tpu.memory_space<vmem>>, vector<48x256xbf16>,
    } else {
    }
    return
  }
  func.func @transform_0(%arg0: i32, %arg1: i32) -> (i32, i32) {
    %c0_i32 = arith.constant 0 : i32
    %c0_i32_0 = arith.constant 0 : i32
    return %arg0, %c0_i32 : i32, i32
  }
  func.func @transform_1(%arg0: i32, %arg1: i32) -> (i32, i32) {
    %c0_i32 = arith.constant 0 : i32
    %c0_i32_0 = arith.constant 0 : i32
    return %c0_i32, %arg1 : i32, i32
  }
  func.func @transform_2(%arg0: i32, %arg1: i32) -> (i32, i32) {
    %c0_i32 = arith.constant 0 : i32
    %c0_i32_0 = arith.constant 0 : i32
    return %arg1, %c0_i32 : i32, i32
  }
  func.func @transform_3(%arg0: i32, %arg1: i32) -> (i32, i32) {
    %c0_i32 = arith.constant 0 : i32
    %c0_i32_0 = arith.constant 0 : i32
    return %arg0, %c0_i32 : i32, i32
  }
}

</mosaic_0001>

<bundles_post_ra>
// kernel: tpu_custom_call.1
= control target key start
LH: loop header
LB: loop body
LE: loop exit
PB: predicated region body
PF: predicated region fallthrough
CT: control target
= control target key end

     0   :  { %8 = vsyncpa [#allocation4], 0  ;;  %s1869_s0 = inlined_call_operand.hbm [shape: bf16[48,256], index: 0, kind: input, shape index: {}]   ;;  %s1870_s1 = inlined_call_operand.hbm [shape: bf16[256,512], index: 1, kind: input, shape index: {}]   ;;  %s1871_s2 = inlined_call_operand.hbm [shape: bf16[512,256], index: 2, kind: input, shape index: {}]   ;;  %s1872_s3 = inlined_call_operand.hbm [shape: bf16[48,256], index: 3, kind: output, shape index: {}]  }
   0x1   :  { %9 = vsyncpa [#allocation7], 0 }
   0x2   :  { %10 = vsyncpa [#allocation5], 0  ;;  %s1760_s12 = smov [#allocation6]   ;;  %s1666_s16 = scalar_lea.hbm %s1870_s1, 8192 }
   0x3   :  { %s28_s13 = sshll.u32 %s1760_s12, 4  ;;  %p1667_p0 = scmp.ne.s32.totalorder %s1870_s1, %s1666_s16  ;;  %s29_s13 = int_to_ptr.vmem [resolvable:$true] %s28_s13 }
   0x4   :  { %p1670_p1 = scmp.lt.u32.totalorder %s1666_s16, %s1870_s1 }
   0x6   :  { %p1672_p2 = pnand %p1670_p1, %p1667_p0 }
   0x8   :  { %1675 = shalt.err (!%p1672_p2)
}
   0x9   :  { %s1676_s21 = scalar_lea.vmem %s29_s13, 8192  ;;  %p1681_p4 = scmp.lt.s32.totalorder %s29_s13, %s29_s13 }
   0xa   :  { %p1677_p3 = scmp.ne.s32.totalorder %s29_s13, %s1676_s21  ;;  %p1682_p5 = scmp.lt.s32.totalorder %s1676_s21, %s1676_s21 }
   0xc   :  { %p1683_p6 = por %p1682_p5, %p1681_p4 }
   0xe   :  { %p1684_p7 = pnand %p1683_p6, %p1677_p3 }
  0x10   :  { %1687 = shalt.err (!%p1684_p7)
}
  0x11   :  { %s1761_s22 = smov 256   ;;  %s1762_s23 = smov 16  }
  0x12   :  { %34 = dma.hbm_to_vmem [thread:$0]  %s1870_s1, 8192, %s29_s13, [#allocation7], %s1761_s22, %s1761_s22, %s1762_s23  }
  0x13   :  { %s1763_s26 = smov [#allocation3]   ;;  %s1688_s30 = scalar_lea.hbm %s1869_s0, 768 }
  0x14   :  { %s16_s27 = sshll.u32 %s1763_s26, 4  ;;  %p1689_p8 = scmp.ne.s32.totalorder %s1869_s0, %s1688_s30  ;;  %s17_s27 = int_to_ptr.vmem [resolvable:$true] %s16_s27 }
  0x15   :  { %p1692_p9 = scmp.lt.u32.totalorder %s1688_s30, %s1869_s0 }
  0x17   :  { %p1694_p10 = pnand %p1692_p9, %p1689_p8 }
  0x19   :  { %1697 = shalt.err (!%p1694_p10)
}
  0x1a   :  { %s1698_s8 = scalar_lea.vmem %s17_s27, 768  ;;  %p1703_p12 = scmp.lt.s32.totalorder %s17_s27, %s17_s27 }
  0x1b   :  { %p1699_p11 = scmp.ne.s32.totalorder %s17_s27, %s1698_s8  ;;  %p1704_p13 = scmp.lt.s32.totalorder %s1698_s8, %s1698_s8 }
  0x1d   :  { %p1705_p0 = por %p1704_p13, %p1703_p12 }
  0x1f   :  { %p1706_p1 = pnand %p1705_p0, %p1699_p11 }
  0x21   :  { %1709 = shalt.err (!%p1706_p1)
}
  0x22   :  { %s1764_s1 = smov 128   ;;  %s1765_s9 = smov 8  }
  0x23   :  { %22 = dma.hbm_to_vmem [thread:$0]  %s1869_s0, 768, %s17_s27, [#allocation4], %s1764_s1, %s1764_s1, %s1765_s9  }
  0x24   :  { %s1766_s12 = smov [#allocation8]   ;;  %s1710_s16 = scalar_lea.hbm %s1871_s2, 8192 }
  0x25   :  { %s40_s13 = sshll.u32 %s1766_s12, 4  ;;  %p1711_p2 = scmp.ne.s32.totalorder %s1871_s2, %s1710_s16  ;;  %s41_s13 = int_to_ptr.vmem [resolvable:$true] %s40_s13 }
  0x26   :  { %p1714_p3 = scmp.lt.u32.totalorder %s1710_s16, %s1871_s2 }
  0x28   :  { %p1716_p4 = pnand %p1714_p3, %p1711_p2 }
  0x2a   :  { %1719 = shalt.err (!%p1716_p4)
}
  0x2b   :  { %s1720_s21 = scalar_lea.vmem %s41_s13, 8192  ;;  %p1725_p6 = scmp.lt.s32.totalorder %s41_s13, %s41_s13 }
  0x2c   :  { %p1721_p5 = scmp.ne.s32.totalorder %s41_s13, %s1720_s21  ;;  %p1726_p7 = scmp.lt.s32.totalorder %s1720_s21, %s1720_s21 }
  0x2e   :  { %p1727_p8 = por %p1726_p7, %p1725_p6 }
  0x30   :  { %p1728_p9 = pnand %p1727_p8, %p1721_p5 }
  0x32   :  { %1731 = shalt.err (!%p1728_p9)
}
  0x33   :  { %46 = dma.hbm_to_vmem [thread:$0]  %s1871_s2, 8192, %s41_s13, [#allocation7], %s1764_s1, %s1764_s1, %s1765_s9  }
  0x34   :  { %1754 = dma.done.wait [#allocation4], 768  }
  0x35   :  { %1755 = vsyncadd [#allocation4], 4294966528 }
  0x36   :  { %1756 = dma.done.wait [#allocation7], 16384  }
  0x37   :  { %1757 = vsyncadd [#allocation7], 4294950912  ;;  %v1465_v0 = vld [vmem:[#allocation6 + $0x4] ss:$16 sps:$4 sm:$0xff]   ;;  %v1467_v1 = vld [vmem:[#allocation6] ss:$16 sps:$4 sm:$0xff]  }
  0x38   :  { %492 = vmatprep.subr.bf16.mxu1 %v1465_v0  ;;  %v1468_v2 = vld [vmem:[#allocation6 + $0x24] ss:$16 sps:$4 sm:$0xff]   ;;  %v1470_v3 = vld [vmem:[#allocation6 + $0x20] ss:$16 sps:$4 sm:$0xff]   ;;  %v1518_v43 = vld [vmem:[#allocation6 + $0xc] ss:$16 sps:$4 sm:$0xff]  }
  0x39   :  { %493 = vmatpush1.bf16.msra.mxu1 %v1467_v1  ;;  %v1471_v4 = vld [vmem:[#allocation6 + $0x44] ss:$16 sps:$4 sm:$0xff]   ;;  %v1473_v5 = vld [vmem:[#allocation6 + $0x40] ss:$16 sps:$4 sm:$0xff]   ;;  %v1516_v44 = vld [vmem:[#allocation6 + $0x8] ss:$16 sps:$4 sm:$0xff]  }
  0x3a   :  { %494 = vmatprep.subr.bf16.mxu1 %v1468_v2  ;;  %v1474_v6 = vld [vmem:[#allocation6 + $0x64] ss:$16 sps:$4 sm:$0xff]   ;;  %v1476_v7 = vld [vmem:[#allocation6 + $0x60] ss:$16 sps:$4 sm:$0xff]   ;;  %v1521_v45 = vld [vmem:[#allocation6 + $0x2c] ss:$16 sps:$4 sm:$0xff]  }
  0x3b   :  { %v1477_v8 = vld [vmem:[#allocation6 + $0x84] ss:$16 sps:$4 sm:$0xff]   ;;  %v1479_v9 = vld [vmem:[#allocation6 + $0x80] ss:$16 sps:$4 sm:$0xff]   ;;  %v1519_v50 = vld [vmem:[#allocation6 + $0x28] ss:$16 sps:$4 sm:$0xff]  }
  0x3c   :  { %v1480_v10 = vld [vmem:[#allocation6 + $0xa4] ss:$16 sps:$4 sm:$0xff]   ;;  %v1482_v11 = vld [vmem:[#allocation6 + $0xa0] ss:$16 sps:$4 sm:$0xff]   ;;  %v1524_v52 = vld [vmem:[#allocation6 + $0x4c] ss:$16 sps:$4 sm:$0xff]  }
  0x3d   :  { %495 = vmatpush1.bf16.msra.mxu1 %v1470_v3  ;;  %v1483_v12 = vld [vmem:[#allocation6 + $0xc4] ss:$16 sps:$4 sm:$0xff]   ;;  %v1485_v14 = vld [vmem:[#allocation6 + $0xc0] ss:$16 sps:$4 sm:$0xff]   ;;  %v1522_v55 = vld [vmem:[#allocation6 + $0x48] ss:$16 sps:$4 sm:$0xff]  }
  0x3e   :  { %496 = vmatprep.subr.bf16.mxu1 %v1471_v4  ;;  %v1830_v13 = vld [vmem:[#allocation3 + $0x4] ss:$8 sps:$4 sm:$0xff]   ;;  %v1488_v16 = vld [vmem:[#allocation6 + $0xe0] ss:$16 sps:$4 sm:$0xff]   ;;  %v1570_v28 = vld [vmem:[#allocation8 + $0x4] ss:$8 sps:$4 sm:$0xff]  }
  0x3f   :  { %v1486_v15 = vld [vmem:[#allocation6 + $0xe4] ss:$16 sps:$4 sm:$0xff]   ;;  %524 = vmatprep.mubr.bf16.mxu1 %v1830_v13  ;;  %v1491_v18 = vld [vmem:[#allocation6 + $0x100] ss:$16 sps:$4 sm:$0xff]   ;;  %1074 = vmatprep.subr.bf16.mxu0 %v1570_v28  ;;  %v1527_v57 = vld [vmem:[#allocation6 + $0x6c] ss:$16 sps:$4 sm:$0xff]  }
  0x40   :  { %v1489_v17 = vld [vmem:[#allocation6 + $0x104] ss:$16 sps:$4 sm:$0xff]   ;;  %v1494_v20 = vld [vmem:[#allocation6 + $0x120] ss:$16 sps:$4 sm:$0xff]   ;;  %v1525_v60 = vld [vmem:[#allocation6 + $0x68] ss:$16 sps:$4 sm:$0xff]  }
  0x41   :  { %497 = vmatpush1.bf16.msra.mxu1 %v1473_v5  ;;  %v1492_v19 = vld [vmem:[#allocation6 + $0x124] ss:$16 sps:$4 sm:$0xff]   ;;  %v1497_v22 = vld [vmem:[#allocation6 + $0x140] ss:$16 sps:$4 sm:$0xff]   ;;  %v1530_v62 = vld [vmem:[#allocation6 + $0x8c] ss:$16 sps:$4 sm:$0xff]  }
  0x42   :  { %498 = vmatprep.subr.bf16.mxu1 %v1474_v6  ;;  %v1495_v21 = vld [vmem:[#allocation6 + $0x144] ss:$16 sps:$4 sm:$0xff]   ;;  %v1500_v24 = vld [vmem:[#allocation6 + $0x160] ss:$16 sps:$4 sm:$0xff]   ;;  %v1528_v1 = vld [vmem:[#allocation6 + $0x88] ss:$16 sps:$4 sm:$0xff]  }
  0x43   :  { %v1498_v23 = vld [vmem:[#allocation6 + $0x164] ss:$16 sps:$4 sm:$0xff]   ;;  %v1503_v26 = vld [vmem:[#allocation6 + $0x180] ss:$16 sps:$4 sm:$0xff]   ;;  %v1533_v2 = vld [vmem:[#allocation6 + $0xac] ss:$16 sps:$4 sm:$0xff]  }
  0x44   :  { %v1501_v25 = vld [vmem:[#allocation6 + $0x184] ss:$16 sps:$4 sm:$0xff]   ;;  %v1572_v29 = vld [vmem:[#allocation8] ss:$8 sps:$4 sm:$0xff]   ;;  %v1575_v31 = vld [vmem:[#allocation8 + $0x10] ss:$8 sps:$4 sm:$0xff]  }
  0x45   :  { %499 = vmatpush1.bf16.msra.mxu1 %v1476_v7  ;;  %v1504_v27 = vld [vmem:[#allocation6 + $0x1a4] ss:$16 sps:$4 sm:$0xff]   ;;  %1075 = vmatpush1.bf16.msra.mxu0 %v1572_v29  ;;  %v1506_v32 = vld [vmem:[#allocation6 + $0x1a0] ss:$16 sps:$4 sm:$0xff]   ;;  %v1531_v5 = vld [vmem:[#allocation6 + $0xa8] ss:$16 sps:$4 sm:$0xff]  }
  0x46   :  { %500 = vmatprep.subr.bf16.mxu1 %v1477_v8  ;;  %v1573_v30 = vld [vmem:[#allocation8 + $0x14] ss:$8 sps:$4 sm:$0xff]   ;;  %v1576_v33 = vld [vmem:[#allocation8 + $0x24] ss:$8 sps:$4 sm:$0xff]   ;;  %v1578_v35 = vld [vmem:[#allocation8 + $0x20] ss:$8 sps:$4 sm:$0xff]  }
  0x47   :  { %1076 = vmatprep.subr.bf16.mxu0 %v1573_v30  ;;  %v1507_v34 = vld [vmem:[#allocation6 + $0x1c4] ss:$16 sps:$4 sm:$0xff]   ;;  %v1509_v36 = vld [vmem:[#allocation6 + $0x1c0] ss:$16 sps:$4 sm:$0xff]   ;;  %v1536_v7 = vld [vmem:[#allocation6 + $0xcc] ss:$16 sps:$4 sm:$0xff]  }
  0x48   :  { %v1579_v37 = vld [vmem:[#allocation8 + $0x34] ss:$8 sps:$4 sm:$0xff]   ;;  %v1581_v39 = vld [vmem:[#allocation8 + $0x30] ss:$8 sps:$4 sm:$0xff]   ;;  %v1582_v41 = vld [vmem:[#allocation8 + $0x44] ss:$8 sps:$4 sm:$0xff]  }
  0x49   :  { %501 = vmatpush1.bf16.msra.mxu1 %v1479_v9  ;;  %1077 = vmatpush1.bf16.msra.mxu0 %v1575_v31  ;;  %v1510_v38 = vld [vmem:[#allocation6 + $0x1e4] ss:$16 sps:$4 sm:$0xff]   ;;  %v1512_v40 = vld [vmem:[#allocation6 + $0x1e0] ss:$16 sps:$4 sm:$0xff]   ;;  %v1534_v9 = vld [vmem:[#allocation6 + $0xc8] ss:$16 sps:$4 sm:$0xff]  }
  0x4a   :  { %502 = vmatprep.subr.bf16.mxu1 %v1480_v10  ;;  %1078 = vmatprep.subr.bf16.mxu0 %v1576_v33  ;;  %v1833_v42 = vld [vmem:[#allocation3] ss:$8 sps:$4 sm:$0xff]   ;;  %v1584_v46 = vld [vmem:[#allocation8 + $0x40] ss:$8 sps:$4 sm:$0xff]   ;;  %v1835_v47 = vld [vmem:[#allocation3 + $0x14] ss:$8 sps:$4 sm:$0xff]  }
  0x4b   :  { %v1585_v48 = vld [vmem:[#allocation8 + $0x54] ss:$8 sps:$4 sm:$0xff]   ;;  %v1587_v49 = vld [vmem:[#allocation8 + $0x50] ss:$8 sps:$4 sm:$0xff]   ;;  %v1588_v51 = vld [vmem:[#allocation8 + $0x64] ss:$8 sps:$4 sm:$0xff]  }
  0x4c   :  { %v1839_v53 = vld [vmem:[#allocation3 + $0x10] ss:$8 sps:$4 sm:$0xff]   ;;  %v1841_v56 = vld [vmem:[#allocation3 + $0x24] ss:$8 sps:$4 sm:$0xff]   ;;  %v1593_v59 = vld [vmem:[#allocation8 + $0x70] ss:$8 sps:$4 sm:$0xff]  }
  0x4d   :  { %503 = vmatpush1.bf16.msra.mxu1 %v1482_v11  ;;  %1079 = vmatpush1.bf16.msra.mxu0 %v1578_v35  ;;  %v1590_v54 = vld [vmem:[#allocation8 + $0x60] ss:$8 sps:$4 sm:$0xff]   ;;  %v1591_v58 = vld [vmem:[#allocation8 + $0x74] ss:$8 sps:$4 sm:$0xff]   ;;  %v1594_v61 = vld [vmem:[#allocation8 + $0x84] ss:$8 sps:$4 sm:$0xff]  }
  0x4e   :  { %504 = vmatprep.subr.bf16.mxu1 %v1483_v12  ;;  %1080 = vmatprep.subr.bf16.mxu0 %v1579_v37  ;;  %v1845_v63 = vld [vmem:[#allocation3 + $0x20] ss:$8 sps:$4 sm:$0xff]   ;;  %v1596_v0 = vld [vmem:[#allocation8 + $0x80] ss:$8 sps:$4 sm:$0xff]   ;;  %v1597_v3 = vld [vmem:[#allocation8 + $0x94] ss:$8 sps:$4 sm:$0xff]  }
  0x4f   :  { %v1599_v4 = vld [vmem:[#allocation8 + $0x90] ss:$8 sps:$4 sm:$0xff]   ;;  %v1600_v6 = vld [vmem:[#allocation8 + $0xa4] ss:$8 sps:$4 sm:$0xff]   ;;  %v1602_v8 = vld [vmem:[#allocation8 + $0xa0] ss:$8 sps:$4 sm:$0xff]  }
  0x50   :  { %v1603_v10 = vld [vmem:[#allocation8 + $0xb4] ss:$8 sps:$4 sm:$0xff]   ;;  %v1605_v12 = vld [vmem:[#allocation8 + $0xb0] ss:$8 sps:$4 sm:$0xff]   ;;  %v1614_v35 = vld [vmem:[#allocation8 + $0xe0] ss:$8 sps:$4 sm:$0xff]  }
  0x51   :  { %505 = vmatpush1.bf16.msra.mxu1 %v1485_v14  ;;  %1081 = vmatpush1.bf16.msra.mxu0 %v1581_v39  ;;  %v1539_v11 = vld [vmem:[#allocation6 + $0xec] ss:$16 sps:$4 sm:$0xff]   ;;  %v1537_v14 = vld [vmem:[#allocation6 + $0xe8] ss:$16 sps:$4 sm:$0xff]   ;;  %s1767_s2 = smov [#allocation9]  }
  0x52   :  { %506 = vmatprep.subr.bf16.mxu1 %v1486_v15  ;;  %1082 = vmatprep.subr.bf16.mxu0 %v1582_v41  ;;  %v1606_v15 = vld [vmem:[#allocation8 + $0xc4] ss:$8 sps:$4 sm:$0xff]   ;;  %v1561_v28 = vld [vmem:[#allocation6 + $0x1a8] ss:$16 sps:$4 sm:$0xff]   ;;  %s1286_s23 = sshll.u32 %s1767_s2, 4  ;;  %s1287_s23 = int_to_ptr.vmem [resolvable:$true] %s1286_s23 }
  0x53   :  { %v1566_v29 = vld [vmem:[#allocation6 + $0x1cc] ss:$16 sps:$4 sm:$0xff]   ;;  %v1564_v30 = vld [vmem:[#allocation6 + $0x1c8] ss:$16 sps:$4 sm:$0xff]   ;;  %s1732_s24 = scalar_lea.vmem %s1287_s23, 768  ;;  %p1737_p11 = scmp.lt.s32.totalorder %s1287_s23, %s1287_s23 }
  0x54   :  { %v1569_v31 = vld [vmem:[#allocation6 + $0x1ec] ss:$16 sps:$4 sm:$0xff]   ;;  %v1611_v33 = vld [vmem:[#allocation8 + $0xd0] ss:$8 sps:$4 sm:$0xff]   ;;  %p1733_p10 = scmp.ne.s32.totalorder %s1287_s23, %s1732_s24  ;;  %p1738_p12 = scmp.lt.s32.totalorder %s1732_s24, %s1732_s24 }
  0x55   :  { %507 = vmatpush1.bf16.msra.mxu1 %v1488_v16  ;;  %1083 = vmatpush1.bf16.msra.mxu0 %v1584_v46  ;;  %v1608_v16 = vld [vmem:[#allocation8 + $0xc0] ss:$8 sps:$4 sm:$0xff]   ;;  %v1617_v37 = vld [vmem:[#allocation8 + $0xf0] ss:$8 sps:$4 sm:$0xff]  }
  0x56   :  { %508 = vmatprep.subr.bf16.mxu1 %v1489_v17  ;;  %1084 = vmatprep.subr.bf16.mxu0 %v1585_v48  ;;  %v1540_v17 = vld [vmem:[#allocation6 + $0x108] ss:$16 sps:$4 sm:$0xff]   ;;  %p1739_p13 = por %p1738_p12, %p1737_p11 }
  0x58   :  { %p1740_p0 = pnand %p1739_p13, %p1733_p10 }
  0x59   :  { %509 = vmatpush1.bf16.msra.mxu1 %v1491_v18  ;;  %1085 = vmatpush1.bf16.msra.mxu0 %v1587_v49  ;;  %v1609_v18 = vld [vmem:[#allocation8 + $0xd4] ss:$8 sps:$4 sm:$0xff]  }
  0x5a   :  { %510 = vmatprep.subr.bf16.mxu1 %v1492_v19  ;;  %1086 = vmatprep.subr.bf16.mxu0 %v1588_v51  ;;  %v1545_v19 = vld [vmem:[#allocation6 + $0x12c] ss:$16 sps:$4 sm:$0xff]  }
  0x5d   :  { %511 = vmatpush1.bf16.msra.mxu1 %v1494_v20  ;;  %1087 = vmatpush1.bf16.msra.mxu0 %v1590_v54  ;;  %v1543_v20 = vld [vmem:[#allocation6 + $0x128] ss:$16 sps:$4 sm:$0xff]  }
  0x5e   :  { %512 = vmatprep.subr.bf16.mxu1 %v1495_v21  ;;  %1088 = vmatprep.subr.bf16.mxu0 %v1591_v58  ;;  %v1548_v21 = vld [vmem:[#allocation6 + $0x14c] ss:$16 sps:$4 sm:$0xff]  }
  0x61   :  { %513 = vmatpush1.bf16.msra.mxu1 %v1497_v22  ;;  %1089 = vmatpush1.bf16.msra.mxu0 %v1593_v59  ;;  %v1546_v22 = vld [vmem:[#allocation6 + $0x148] ss:$16 sps:$4 sm:$0xff]  }
  0x62   :  { %514 = vmatprep.subr.bf16.mxu1 %v1498_v23  ;;  %1090 = vmatprep.subr.bf16.mxu0 %v1594_v61  ;;  %v1554_v23 = vld [vmem:[#allocation6 + $0x16c] ss:$16 sps:$4 sm:$0xff]  }
  0x65   :  { %515 = vmatpush1.bf16.msra.mxu1 %v1500_v24  ;;  %1091 = vmatpush1.bf16.msra.mxu0 %v1596_v0  ;;  %v1552_v24 = vld [vmem:[#allocation6 + $0x168] ss:$16 sps:$4 sm:$0xff]  }
  0x66   :  { %516 = vmatprep.subr.bf16.mxu1 %v1501_v25  ;;  %1092 = vmatprep.subr.bf16.mxu0 %v1597_v3  ;;  %v1557_v25 = vld [vmem:[#allocation6 + $0x18c] ss:$16 sps:$4 sm:$0xff]  }
  0x69   :  { %517 = vmatpush1.bf16.msra.mxu1 %v1503_v26  ;;  %1093 = vmatpush1.bf16.msra.mxu0 %v1599_v4  ;;  %v1555_v26 = vld [vmem:[#allocation6 + $0x188] ss:$16 sps:$4 sm:$0xff]  }
  0x6a   :  { %518 = vmatprep.subr.bf16.mxu1 %v1504_v27  ;;  %1094 = vmatprep.subr.bf16.mxu0 %v1600_v6  ;;  %v1563_v27 = vld [vmem:[#allocation6 + $0x1ac] ss:$16 sps:$4 sm:$0xff]   ;;  %v1624_v6 = vld [vmem:[#allocation8 + $0x120] ss:$8 sps:$4 sm:$0xff]  }
  0x6d   :  { %519 = vmatpush1.bf16.msra.mxu1 %v1506_v32  ;;  %1095 = vmatpush1.bf16.msra.mxu0 %v1602_v8  ;;  %v1567_v32 = vld [vmem:[#allocation6 + $0x1e8] ss:$16 sps:$4 sm:$0xff]  }
  0x6e   :  { %520 = vmatprep.subr.bf16.mxu1 %v1507_v34  ;;  %1096 = vmatprep.subr.bf16.mxu0 %v1603_v10  ;;  %v1612_v34 = vld [vmem:[#allocation8 + $0xe4] ss:$8 sps:$4 sm:$0xff]  }
  0x71   :  { %521 = vmatpush1.bf16.msra.mxu1 %v1509_v36  ;;  %1097 = vmatpush1.bf16.msra.mxu0 %v1605_v12  ;;  %v1615_v36 = vld [vmem:[#allocation8 + $0xf4] ss:$8 sps:$4 sm:$0xff]  }
  0x72   :  { %522 = vmatprep.subr.bf16.mxu1 %v1510_v38  ;;  %1098 = vmatprep.subr.bf16.mxu0 %v1606_v15  ;;  %v1620_v38 = vld [vmem:[#allocation8 + $0x104] ss:$8 sps:$4 sm:$0xff]  }
  0x75   :  { %523 = vmatpush1.bf16.msra.mxu1 %v1512_v40  ;;  %1099 = vmatpush1.bf16.msra.mxu0 %v1608_v16 }
  0x76   :  { %555 = vmatprep.subr.bf16.mxu1 %v1518_v43  ;;  %1100 = vmatprep.subr.bf16.mxu0 %v1609_v18 }
  0x78   :  { %525 = vmatmul.mubr.bf16.vlgmr.msra.gmra.mrb[0].mxu1 %v1833_v42 }
  0x79   :  { %556 = vmatpush1.bf16.msra.mxu1 %v1516_v44  ;;  %534 = vmatprep.mubr.bf16.mxu1 %v1835_v47 }
  0x7a   :  { %557 = vmatprep.subr.bf16.mxu1 %v1521_v45  ;;  %1101 = vmatpush1.bf16.msra.mxu0 %v1611_v33  ;;  %v1642_v33 = vld [vmem:[#allocation8 + $0x180] ss:$8 sps:$4 sm:$0xff]  }
  0x7b   :  { %1102 = vmatprep.subr.bf16.mxu0 %v1612_v34  ;;  %v1647_v34 = vld [vmem:[#allocation8 + $0x194] ss:$8 sps:$4 sm:$0xff]  }
  0x7d   :  { %558 = vmatpush1.bf16.msra.mxu1 %v1519_v50 }
  0x7e   :  { %559 = vmatprep.subr.bf16.mxu1 %v1524_v52  ;;  %1103 = vmatpush1.bf16.msra.mxu0 %v1614_v35  ;;  %v1645_v35 = vld [vmem:[#allocation8 + $0x190] ss:$8 sps:$4 sm:$0xff]  }
  0x7f   :  { %1104 = vmatprep.subr.bf16.mxu0 %v1615_v36  ;;  %v1650_v36 = vld [vmem:[#allocation8 + $0x1a4] ss:$8 sps:$4 sm:$0xff]  }
  0x80   :  { %535 = vmatmul.mubr.bf16.gmra.mrb[4].mxu1 %v1839_v53 }
  0x81   :  { %560 = vmatpush1.bf16.msra.mxu1 %v1522_v55  ;;  %544 = vmatprep.mubr.bf16.mxu1 %v1841_v56  ;;  %v1623_v55 = vld [vmem:[#allocation8 + $0x114] ss:$8 sps:$4 sm:$0xff]  }
  0x82   :  { %561 = vmatprep.subr.bf16.mxu1 %v1527_v57  ;;  %1105 = vmatpush1.bf16.msra.mxu0 %v1617_v37  ;;  %v1648_v37 = vld [vmem:[#allocation8 + $0x1a0] ss:$8 sps:$4 sm:$0xff]  }
  0x83   :  { %1137 = vmatprep.subr.bf16.mxu0 %v1620_v38  ;;  %v1653_v38 = vld [vmem:[#allocation8 + $0x1b4] ss:$8 sps:$4 sm:$0xff]  }
  0x85   :  { %562 = vmatpush1.bf16.msra.mxu1 %v1525_v60 }
  0x86   :  { %563 = vmatprep.subr.bf16.mxu1 %v1530_v62 }
  0x88   :  { %545 = vmatmul.mubr.bf16.gmra.mrb[8].mxu1 %v1845_v63 }
  0x89   :  { %564 = vmatpush1.bf16.msra.mxu1 %v1528_v1  ;;  %587 = vmatprep.mubr.bf16.mxu1 %v1830_v13  ;;  %v1542_v13 = vld [vmem:[#allocation6 + $0x10c] ss:$16 sps:$4 sm:$0xff]  }
  0x8a   :  { %565 = vmatprep.subr.bf16.mxu1 %v1533_v2  ;;  %v1626_v2 = vld [vmem:[#allocation8 + $0x124] ss:$8 sps:$4 sm:$0xff]  }
  0x8d   :  { %566 = vmatpush1.bf16.msra.mxu1 %v1531_v5 }
  0x8e   :  { %567 = vmatprep.subr.bf16.mxu1 %v1536_v7 }
  0x91   :  { %568 = vmatpush1.bf16.msra.mxu1 %v1534_v9  ;;  %v1629_v9 = vld [vmem:[#allocation8 + $0x134] ss:$8 sps:$4 sm:$0xff]  }
  0x92   :  { %569 = vmatprep.subr.bf16.mxu1 %v1539_v11 }
  0x95   :  { %570 = vmatpush1.bf16.msra.mxu1 %v1537_v14 }
  0x96   :  { %571 = vmatprep.subr.bf16.mxu1 %v1542_v13 }
  0x99   :  { %572 = vmatpush1.bf16.msra.mxu1 %v1540_v17  ;;  %v1627_v17 = vld [vmem:[#allocation8 + $0x130] ss:$8 sps:$4 sm:$0xff]  }
  0x9a   :  { %573 = vmatprep.subr.bf16.mxu1 %v1545_v19 }
  0x9d   :  { %574 = vmatpush1.bf16.msra.mxu1 %v1543_v20  ;;  %v1632_v20 = vld [vmem:[#allocation8 + $0x144] ss:$8 sps:$4 sm:$0xff]  }
  0x9e   :  { %575 = vmatprep.subr.bf16.mxu1 %v1548_v21 }
  0xa1   :  { %576 = vmatpush1.bf16.msra.mxu1 %v1546_v22 }
  0xa2   :  { %577 = vmatprep.subr.bf16.mxu1 %v1554_v23 }
  0xa5   :  { %578 = vmatpush1.bf16.msra.mxu1 %v1552_v24  ;;  %v1630_v24 = vld [vmem:[#allocation8 + $0x140] ss:$8 sps:$4 sm:$0xff]  }
  0xa6   :  { %579 = vmatprep.subr.bf16.mxu1 %v1557_v25 }
  0xa9   :  { %580 = vmatpush1.bf16.msra.mxu1 %v1555_v26  ;;  %v1635_v26 = vld [vmem:[#allocation8 + $0x154] ss:$8 sps:$4 sm:$0xff]  }
  0xaa   :  { %581 = vmatprep.subr.bf16.mxu1 %v1563_v27  ;;  %v1633_v27 = vld [vmem:[#allocation8 + $0x150] ss:$8 sps:$4 sm:$0xff]  }
  0xad   :  { %582 = vmatpush1.bf16.msra.mxu1 %v1561_v28  ;;  %v1638_v28 = vld [vmem:[#allocation8 + $0x164] ss:$8 sps:$4 sm:$0xff]  }
  0xae   :  { %583 = vmatprep.subr.bf16.mxu1 %v1566_v29  ;;  %v1636_v29 = vld [vmem:[#allocation8 + $0x160] ss:$8 sps:$4 sm:$0xff]  }
  0xb1   :  { %584 = vmatpush1.bf16.msra.mxu1 %v1564_v30  ;;  %v1641_v30 = vld [vmem:[#allocation8 + $0x174] ss:$8 sps:$4 sm:$0xff]  }
  0xb2   :  { %585 = vmatprep.subr.bf16.mxu1 %v1569_v31  ;;  %v1639_v31 = vld [vmem:[#allocation8 + $0x170] ss:$8 sps:$4 sm:$0xff]  }
  0xb5   :  { %586 = vmatpush1.bf16.msra.mxu1 %v1567_v32  ;;  %v1644_v32 = vld [vmem:[#allocation8 + $0x184] ss:$8 sps:$4 sm:$0xff]  }
  0xb8   :  { %588 = vmatmul.mubr.bf16.vlgmr.msra.gmra.mrb[12].mxu1 %v1833_v42 }
  0xb9   :  { %597 = vmatprep.mubr.bf16.mxu1 %v1835_v47 }
  0xc0   :  { %598 = vmatmul.mubr.bf16.gmra.mrb[16].mxu1 %v1839_v53  ;;  %v1618_v53 = vld [vmem:[#allocation8 + $0x100] ss:$8 sps:$4 sm:$0xff]  }
  0xc1   :  { %607 = vmatprep.mubr.bf16.mxu1 %v1841_v56 }
  0xc8   :  { %608 = vmatmul.mubr.bf16.gmra.mrb[20].mxu1 %v1845_v63  ;;  %v1621_v63 = vld [vmem:[#allocation8 + $0x110] ss:$8 sps:$4 sm:$0xff]  }
 0x14b   :  { %v526_v39 = vpop.f32.mrb[0].mxu1 }
 0x14c   :  { %v618_v40 = vmax.f32 %v526_v39, 0.0  ;;  %v528_v41 = vpop.f32.mrb[1].mxu1  ;;  %v1651_v39 = vld [vmem:[#allocation8 + $0x1b0] ss:$8 sps:$4 sm:$0xff]  }
 0x14d   :  { %v619_v42 = vmax.f32 %v528_v41, 0.0  ;;  %v530_v43 = vpop.f32.mrb[2].mxu1  ;;  %v1654_v41 = vld [vmem:[#allocation8 + $0x1c0] ss:$8 sps:$4 sm:$0xff]  }
 0x14e   :  { %v642_v44 = vmul.f32 %v618_v40, %v618_v40  ;;  %v622_v45 = vmax.f32 %v530_v43, 0.0  ;;  %v532_v46 = vpop.f32.mrb[3].mxu1  ;;  %v1656_v40 = vld [vmem:[#allocation8 + $0x1c4] ss:$8 sps:$4 sm:$0xff]   ;;  %v1657_v43 = vld [vmem:[#allocation8 + $0x1d0] ss:$8 sps:$4 sm:$0xff]  }
 0x14f   :  { %v623_v47 = vmax.f32 %v532_v46, 0.0  ;;  %v643_v49 = vmul.f32 %v619_v42, %v619_v42  ;;  %v1659_v42 = vld [vmem:[#allocation8 + $0x1d4] ss:$8 sps:$4 sm:$0xff]   ;;  %v1660_v46 = vld [vmem:[#allocation8 + $0x1e0] ss:$8 sps:$4 sm:$0xff]  }
 0x150   :  { %v646_v48 = vmul.f32 %v622_v45, %v622_v45 }
 0x151   :  { %v647_v50 = vmul.f32 %v623_v47, %v623_v47 }
 0x152   :  { %v678_v51 = vpack.c.bf16 %v646_v48, %v642_v44  ;;  %v1662_v44 = vld [vmem:[#allocation8 + $0x1e4] ss:$8 sps:$4 sm:$0xff]  }
 0x153   :  { %v679_v52 = vpack.c.bf16 %v647_v50, %v643_v49  ;;  %v536_v54 = vpop.f32.mrb[4].mxu1  ;;  %v1665_v49 = vld [vmem:[#allocation8 + $0x1f4] ss:$8 sps:$4 sm:$0xff]  }
 0x154   :  { %v626_v56 = vmax.f32 %v536_v54, 0.0  ;;  %v538_v57 = vpop.f32.mrb[5].mxu1 }
 0x155   :  { %1106 = vmatprep.mubr.bf16.mxu0 %v679_v52  ;;  %v627_v58 = vmax.f32 %v538_v57, 0.0  ;;  %v540_v59 = vpop.f32.mrb[6].mxu1 }
 0x156   :  { %1107 = vmatmul.mubr.bf16.vlgmr.msra.gmra.mrb[0].mxu0 %v678_v51  ;;  %v650_v60 = vmul.f32 %v626_v56, %v626_v56  ;;  %v630_v61 = vmax.f32 %v540_v59, 0.0  ;;  %v542_v62 = vpop.f32.mrb[7].mxu1 }
 0x157   :  { %1138 = vmatpush1.bf16.msra.mxu0 %v1618_v53  ;;  %v651_v0 = vmul.f32 %v627_v58, %v627_v58  ;;  %v631_v1 = vmax.f32 %v542_v62, 0.0 }
 0x158   :  { %1139 = vmatprep.subr.bf16.mxu0 %v1623_v55  ;;  %v654_v3 = vmul.f32 %v630_v61, %v630_v61  ;;  %v1663_v55 = vld [vmem:[#allocation8 + $0x1f0] ss:$8 sps:$4 sm:$0xff]  }
 0x159   :  { %v655_v4 = vmul.f32 %v631_v1, %v631_v1 }
 0x15a   :  { %v682_v5 = vpack.c.bf16 %v654_v3, %v650_v60 }
 0x15b   :  { %1140 = vmatpush1.bf16.msra.mxu0 %v1621_v63  ;;  %v683_v7 = vpack.c.bf16 %v655_v4, %v651_v0  ;;  %v546_v8 = vpop.f32.mrb[8].mxu1 }
 0x15c   :  { %1141 = vmatprep.subr.bf16.mxu0 %v1626_v2  ;;  %v634_v10 = vmax.f32 %v546_v8, 0.0  ;;  %v548_v11 = vpop.f32.mrb[9].mxu1 }
 0x15d   :  { %v635_v12 = vmax.f32 %v548_v11, 0.0  ;;  %v550_v14 = vpop.f32.mrb[10].mxu1  ;;  %1116 = vmatprep.mubr.bf16.mxu0 %v683_v7 }
 0x15e   :  { %v658_v15 = vmul.f32 %v634_v10, %v634_v10  ;;  %v638_v13 = vmax.f32 %v550_v14, 0.0  ;;  %v552_v16 = vpop.f32.mrb[11].mxu1  ;;  %1117 = vmatmul.mubr.bf16.gmra.mrb[4].mxu0 %v682_v5 }
 0x15f   :  { %1142 = vmatpush1.bf16.msra.mxu0 %v1624_v6  ;;  %v659_v18 = vmul.f32 %v635_v12, %v635_v12  ;;  %v639_v19 = vmax.f32 %v552_v16, 0.0 }
 0x160   :  { %1143 = vmatprep.subr.bf16.mxu0 %v1629_v9  ;;  %v662_v21 = vmul.f32 %v638_v13, %v638_v13 }
 0x161   :  { %v663_v22 = vmul.f32 %v639_v19, %v639_v19 }
 0x162   :  { %v686_v23 = vpack.c.bf16 %v662_v21, %v658_v15 }
 0x163   :  { %1144 = vmatpush1.bf16.msra.mxu0 %v1627_v17  ;;  %v687_v25 = vpack.c.bf16 %v663_v22, %v659_v18 }
 0x164   :  { %1145 = vmatprep.subr.bf16.mxu0 %v1632_v20 }
 0x165   :  { %1126 = vmatprep.mubr.bf16.mxu0 %v687_v25 }
 0x166   :  { %1127 = vmatmul.mubr.bf16.gmra.mrb[8].mxu0 %v686_v23 }
 0x167   :  { %1146 = vmatpush1.bf16.msra.mxu0 %v1630_v24 }
 0x168   :  { %1147 = vmatprep.subr.bf16.mxu0 %v1635_v26 }
 0x16b   :  { %1148 = vmatpush1.bf16.msra.mxu0 %v1633_v27 }
 0x16c   :  { %1149 = vmatprep.subr.bf16.mxu0 %v1638_v28 }
 0x16f   :  { %1150 = vmatpush1.bf16.msra.mxu0 %v1636_v29 }
 0x170   :  { %1151 = vmatprep.subr.bf16.mxu0 %v1641_v30 }
 0x173   :  { %1152 = vmatpush1.bf16.msra.mxu0 %v1639_v31 }
 0x174   :  { %1153 = vmatprep.subr.bf16.mxu0 %v1644_v32 }
 0x177   :  { %1154 = vmatpush1.bf16.msra.mxu0 %v1642_v33 }
 0x178   :  { %1155 = vmatprep.subr.bf16.mxu0 %v1647_v34 }
 0x17b   :  { %1156 = vmatpush1.bf16.msra.mxu0 %v1645_v35 }
 0x17c   :  { %1157 = vmatprep.subr.bf16.mxu0 %v1650_v36 }
 0x17f   :  { %1158 = vmatpush1.bf16.msra.mxu0 %v1648_v37 }
 0x180   :  { %1159 = vmatprep.subr.bf16.mxu0 %v1653_v38 }
 0x183   :  { %1160 = vmatpush1.bf16.msra.mxu0 %v1651_v39 }
 0x184   :  { %1161 = vmatprep.subr.bf16.mxu0 %v1656_v40 }
 0x187   :  { %1162 = vmatpush1.bf16.msra.mxu0 %v1654_v41 }
 0x188   :  { %1163 = vmatprep.subr.bf16.mxu0 %v1659_v42 }
 0x18b   :  { %v589_v45 = vpop.f32.mrb[12].mxu1  ;;  %1164 = vmatpush1.bf16.msra.mxu0 %v1657_v43 }
 0x18c   :  { %v620_v47 = vmax.f32 %v589_v45, 0.0  ;;  %v591_v48 = vpop.f32.mrb[13].mxu1  ;;  %1165 = vmatprep.subr.bf16.mxu0 %v1662_v44 }
 0x18d   :  { %v621_v50 = vmax.f32 %v591_v48, 0.0  ;;  %v593_v51 = vpop.f32.mrb[14].mxu1 }
 0x18e   :  { %v624_v52 = vmax.f32 %v593_v51, 0.0  ;;  %v595_v53 = vpop.f32.mrb[15].mxu1  ;;  %v644_v56 = vmul.f32 %v620_v47, %v620_v47 }
 0x18f   :  { %v625_v54 = vmax.f32 %v595_v53, 0.0  ;;  %1166 = vmatpush1.bf16.msra.mxu0 %v1660_v46  ;;  %v645_v58 = vmul.f32 %v621_v50, %v621_v50 }
 0x190   :  { %v648_v57 = vmul.f32 %v624_v52, %v624_v52  ;;  %1167 = vmatprep.subr.bf16.mxu0 %v1665_v49 }
 0x191   :  { %v649_v59 = vmul.f32 %v625_v54, %v625_v54 }
 0x192   :  { %v680_v60 = vpack.c.bf16 %v648_v57, %v644_v56 }
 0x193   :  { %v681_v61 = vpack.c.bf16 %v649_v59, %v645_v58  ;;  %v599_v62 = vpop.f32.mrb[16].mxu1  ;;  %1168 = vmatpush1.bf16.msra.mxu0 %v1663_v55 }
 0x194   :  { %v628_v63 = vmax.f32 %v599_v62, 0.0  ;;  %v601_v0 = vpop.f32.mrb[17].mxu1 }
 0x195   :  { %v629_v1 = vmax.f32 %v601_v0, 0.0  ;;  %v603_v2 = vpop.f32.mrb[18].mxu1  ;;  %1169 = vmatprep.mubr.bf16.mxu0 %v681_v61 }
 0x196   :  { %v632_v3 = vmax.f32 %v603_v2, 0.0  ;;  %v605_v4 = vpop.f32.mrb[19].mxu1  ;;  %1170 = vmatmul.mubr.bf16.vlgmr.msra.gmra.mrb[0].mxu0 %v680_v60  ;;  %v652_v6 = vmul.f32 %v628_v63, %v628_v63 }
 0x197   :  { %v633_v5 = vmax.f32 %v605_v4, 0.0  ;;  %v653_v8 = vmul.f32 %v629_v1, %v629_v1 }
 0x198   :  { %v656_v7 = vmul.f32 %v632_v3, %v632_v3 }
 0x199   :  { %v657_v9 = vmul.f32 %v633_v5, %v633_v5 }
 0x19a   :  { %v684_v10 = vpack.c.bf16 %v656_v7, %v652_v6 }
 0x19b   :  { %v685_v11 = vpack.c.bf16 %v657_v9, %v653_v8  ;;  %v609_v12 = vpop.f32.mrb[20].mxu1 }
 0x19c   :  { %v636_v14 = vmax.f32 %v609_v12, 0.0  ;;  %v611_v15 = vpop.f32.mrb[21].mxu1 }
 0x19d   :  { %v637_v13 = vmax.f32 %v611_v15, 0.0  ;;  %v613_v16 = vpop.f32.mrb[22].mxu1  ;;  %1179 = vmatprep.mubr.bf16.mxu0 %v685_v11 }
 0x19e   :  { %v640_v17 = vmax.f32 %v613_v16, 0.0  ;;  %v615_v18 = vpop.f32.mrb[23].mxu1  ;;  %1180 = vmatmul.mubr.bf16.gmra.mrb[4].mxu0 %v684_v10  ;;  %v660_v20 = vmul.f32 %v636_v14, %v636_v14 }
 0x19f   :  { %v641_v19 = vmax.f32 %v615_v18, 0.0  ;;  %v661_v22 = vmul.f32 %v637_v13, %v637_v13 }
 0x1a0   :  { %v664_v21 = vmul.f32 %v640_v17, %v640_v17 }
 0x1a1   :  { %v665_v23 = vmul.f32 %v641_v19, %v641_v19 }
 0x1a2   :  { %v688_v24 = vpack.c.bf16 %v664_v21, %v660_v20 }
 0x1a3   :  { %v689_v25 = vpack.c.bf16 %v665_v23, %v661_v22 }
 0x1a5   :  { %1189 = vmatprep.mubr.bf16.mxu0 %v689_v25 }
 0x1a6   :  { %1190 = vmatmul.mubr.bf16.gmra.mrb[8].mxu0 %v688_v24 }
 0x269   :  { %v1171_v26 = vpop.f32.mrb[0].mxu0 }
 0x26a   :  { %v1173_v27 = vpop.f32.mrb[1].mxu0 }
 0x26b   :  { %v1439_v28 = vpack.c.bf16 %v1173_v27, %v1171_v26  ;;  %v1175_v29 = vpop.f32.mrb[2].mxu0 }
 0x26c   :  { %v1177_v30 = vpop.f32.mrb[3].mxu0 }
 0x26d   :  { %1275 = vst [vmem:[#allocation9] sm:$0xff] %v1439_v28  ;;  %v1440_v31 = vpack.c.bf16 %v1177_v30, %v1175_v29 }
 0x26f   :  { %1276 = vst [vmem:[#allocation9 + $0x8] sm:$0xff] %v1440_v31 }
 0x271   :  { %v1181_v32 = vpop.f32.mrb[4].mxu0 }
 0x272   :  { %v1183_v33 = vpop.f32.mrb[5].mxu0 }
 0x273   :  { %v1441_v34 = vpack.c.bf16 %v1183_v33, %v1181_v32  ;;  %v1185_v35 = vpop.f32.mrb[6].mxu0 }
 0x274   :  { %v1187_v36 = vpop.f32.mrb[7].mxu0 }
 0x275   :  { %1277 = vst [vmem:[#allocation9 + $0x10] sm:$0xff] %v1441_v34  ;;  %v1442_v37 = vpack.c.bf16 %v1187_v36, %v1185_v35 }
 0x277   :  { %1278 = vst [vmem:[#allocation9 + $0x18] sm:$0xff] %v1442_v37 }
 0x279   :  { %v1191_v38 = vpop.f32.mrb[8].mxu0 }
 0x27a   :  { %v1193_v39 = vpop.f32.mrb[9].mxu0 }
 0x27b   :  { %v1443_v40 = vpack.c.bf16 %v1193_v39, %v1191_v38  ;;  %v1195_v41 = vpop.f32.mrb[10].mxu0 }
 0x27c   :  { %v1197_v42 = vpop.f32.mrb[11].mxu0 }
 0x27d   :  { %1279 = vst [vmem:[#allocation9 + $0x20] sm:$0xff] %v1443_v40  ;;  %v1444_v43 = vpack.c.bf16 %v1197_v42, %v1195_v41 }
 0x27f   :  { %1280 = vst [vmem:[#allocation9 + $0x28] sm:$0xff] %v1444_v43 }
 0x280   :  { %1743 = shalt.err (!%p1740_p0)
}
 0x281   :  { %s1744_s27 = scalar_lea.hbm %s1872_s3, 768 }
 0x282   :  { %p1745_p1 = scmp.ne.s32.totalorder %s1872_s3, %s1744_s27  ;;  %p1748_p2 = scmp.lt.u32.totalorder %s1744_s27, %s1872_s3 }
 0x284   :  { %p1750_p3 = pnand %p1748_p2, %p1745_p1 }
 0x286   :  { %1753 = shalt.err (!%p1750_p3)
}
 0x287   :  { %1292 = dma.vmem_to_hbm [thread:$0]  %s1287_s23, 768, %s1872_s3, [#allocation5], %s1764_s1, %s1764_s1, %s1765_s9  }
 0x288   :  { %1758 = dma.done.wait [#allocation5], 768  }
 0x289   :  { %1759 = vsyncadd [#allocation5], 4294966528 }
 0x28a   :  { %1296 = vsyncpa [#allocation4], 1 }
 0x28b   :  { %1297 = vsyncpa [#allocation7], 1 }
 0x28c   :  { %1298 = vsyncpa [#allocation5], 1 }

</bundles_post_ra>
